<compile_context>
chip_gen: v7x
topology: tpu7x:2x2x1
jax: 0.10.0
libtpu: 0.0.40
codegen_flags: <defaults>
</compile_context>

<pallas_src>
import functools

import jax
import jax.numpy as jnp
from jax.experimental import pallas as pl
from jax.experimental.pallas import tpu as pltpu

_EPS = 1e-8


def _round_up(x, m):
    return (x + m - 1) // m * m


def _nk_tiles(in_features, out_features, tn_max=512, tk_max=512):
    """Lane-dense tile sizes and padded extents for the N (out) / K (in) dims."""
    tn = min(tn_max, _round_up(out_features, 128))
    tk = min(tk_max, _round_up(in_features, 128))
    return tn, tk, _round_up(out_features, tn), _round_up(in_features, tk)


def prepare_luq_params(weight, bias, matmul_dtype=jnp.bfloat16):
    """One-time (init-time) parameter prep: pad to lane-dense tile multiples,
    transpose out of the torch (out, in) layout and cast for the MXU.
    None of this is repeated per forward call."""
    out_features, in_features = weight.shape
    tn, tk, n_pad, k_pad = _nk_tiles(in_features, out_features)
    w = jnp.asarray(weight, jnp.float32)
    w = jnp.pad(w, ((0, n_pad - out_features), (0, k_pad - in_features)))
    w_t = w.T.astype(matmul_dtype)                      # (K_pad, N_pad), no per-call .T
    b = jnp.pad(jnp.asarray(bias, jnp.float32), (0, n_pad - out_features))
    return w_t, b.reshape(1, n_pad)


def _luq_scalars(x, fc_log_min, fc_log_max, scale_factor):
    """Hoisted global reduction + precomputed scalar factors (no per-element div)."""
    ax = jnp.abs(x)
    # log is monotone, so min/max of log(|x|+eps) == log(min/max(|x|)+eps).
    log_min_x = jnp.log(jnp.min(ax) + _EPS)
    log_max_x = jnp.log(jnp.max(ax) + _EPS)
    inv_q = scale_factor / (log_max_x - log_min_x)       # quantize scale
    log_min = fc_log_min + log_min_x
    log_max = fc_log_max + log_max_x
    dq_scale = (log_max - log_min) / scale_factor        # dequantize scale
    return log_min_x, inv_q, dq_scale, log_min


def _luq_linear_kernel(scal_ref, x_ref, w_ref, sign_ref, b_ref, o_ref, acc_ref,
                       *, matmul_dtype):
    """Per-tile LUQ quantize -> MXU matmul accumulate -> dequant epilogue."""
    k = pl.program_id(2)

    @pl.when(k == 0)
    def _init():
        acc_ref[...] = jnp.zeros_like(acc_ref)

    # ---- LUQ quantize of this (tm, tk) activation tile (scalars from SMEM) ----
    log_min_x = scal_ref[0]
    inv_q = scal_ref[1]
    log_t = jnp.log(jnp.abs(x_ref[...]) + _EPS)
    q = jnp.round((log_t - log_min_x) * inv_q)   # exact integers in [0, 2^bits-1]
    # int8 round-trip dropped: exact small ints feed the MXU directly (bf16/f32).
    acc_ref[...] += jnp.dot(q.astype(matmul_dtype), w_ref[...],
                            preferred_element_type=jnp.float32)

    # ---- epilogue: dequantize + sign * exp + bias (once per (i, j) tile) ----
    @pl.when(k == pl.num_programs(2) - 1)
    def _finalize():
        dq_scale = scal_ref[2]
        log_min = scal_ref[3]
        fc_sign = scal_ref[4]
        log_dq = acc_ref[...] * dq_scale + log_min
        out = (fc_sign * sign_ref[...]) * jnp.exp(log_dq)
        o_ref[...] = out + b_ref[...]


def luq_linear(x, w_prepared, b_prepared, fc_log_min, fc_log_max, fc_sign,
               bit_width=4, matmul_dtype=jnp.bfloat16, tm_max=256):
    """x: (B, IN) f32. w_prepared/b_prepared come from prepare_luq_params."""
    B, in_features = x.shape
    out_features = in_features      # reference broadcast requires IN == OUT
    assert bit_width <= 7, "quantized values must stay exact in bf16"
    scale_factor = float(2 ** bit_width - 1)

    tn, tk, n_pad, k_pad = _nk_tiles(in_features, out_features)
    assert w_prepared.shape == (k_pad, n_pad), "weight not prepared for this layer"
    assert b_prepared.shape == (1, n_pad)
    tm = min(tm_max, _round_up(B, 8))
    m_pad = _round_up(B, tm)

    x = jnp.asarray(x, jnp.float32)

    # Hoisted global reduction -> SMEM scalars (quantize is purely per-tile in-kernel).
    log_min_x, inv_q, dq_scale, log_min = _luq_scalars(
        x, fc_log_min, fc_log_max, scale_factor)
    scalars = jnp.stack([log_min_x, inv_q, dq_scale, log_min,
                         jnp.asarray(fc_sign, jnp.float32)]).astype(jnp.float32)

    # Precomputed sign(x); it is consumed at the output's N coordinate (IN == OUT).
    sign_x = jnp.sign(x)

    # Pad to tile multiples: lane-dense (>=128) N/K, sublane-dense (8) M.
    x_p = jnp.pad(x, ((0, m_pad - B), (0, k_pad - in_features)))
    sign_p = jnp.pad(sign_x, ((0, m_pad - B), (0, n_pad - out_features)))

    grid = (m_pad // tm, n_pad // tn, k_pad // tk)
    kernel = functools.partial(_luq_linear_kernel, matmul_dtype=matmul_dtype)

    w_bytes = jnp.finfo(matmul_dtype).bits // 8 if matmul_dtype != jnp.float32 else 4
    cost = pl.CostEstimate(
        flops=2 * m_pad * n_pad * k_pad,
        transcendentals=m_pad * k_pad * grid[1] + m_pad * n_pad,
        bytes_accessed=int(4 * (m_pad * k_pad * grid[1] + 2 * m_pad * n_pad + n_pad)
                           + w_bytes * k_pad * n_pad * grid[0]),
    )

    out = pl.pallas_call(
        kernel,
        out_shape=jax.ShapeDtypeStruct((m_pad, n_pad), jnp.float32),
        grid=grid,
        in_specs=[
            pl.BlockSpec(memory_space=pltpu.SMEM),                  # hoisted scalars
            pl.BlockSpec((tm, tk), lambda i, j, k: (i, k)),         # x (quantized per tile)
            pl.BlockSpec((tk, tn), lambda i, j, k: (k, j)),         # W^T (padded, pre-transposed)
            pl.BlockSpec((tm, tn), lambda i, j, k: (i, j)),         # sign(x) at N coords
            pl.BlockSpec((1, tn), lambda i, j, k: (0, j)),          # bias (epilogue only)
        ],
        out_specs=pl.BlockSpec((tm, tn), lambda i, j, k: (i, j)),
        scratch_shapes=[pltpu.VMEM((tm, tn), jnp.float32)],
        compiler_params=pltpu.CompilerParams(
            dimension_semantics=("parallel", "parallel", "arbitrary"),
            vmem_limit_bytes=48 * 1024 * 1024),
        cost_estimate=cost,
    )(scalars, x_p, w_prepared, b_prepared if False else sign_p, b_prepared) \
        if False else pl.pallas_call(
        kernel,
        out_shape=jax.ShapeDtypeStruct((m_pad, n_pad), jnp.float32),
        grid=grid,
        in_specs=[
            pl.BlockSpec(memory_space=pltpu.SMEM),
            pl.BlockSpec((tm, tk), lambda i, j, k: (i, k)),
            pl.BlockSpec((tk, tn), lambda i, j, k: (k, j)),
            pl.BlockSpec((tm, tn), lambda i, j, k: (i, j)),
            pl.BlockSpec((1, tn), lambda i, j, k: (0, j)),
        ],
        out_specs=pl.BlockSpec((tm, tn), lambda i, j, k: (i, j)),
        scratch_shapes=[pltpu.VMEM((tm, tn), jnp.float32)],
        compiler_params=pltpu.CompilerParams(
            dimension_semantics=("parallel", "parallel", "arbitrary"),
            vmem_limit_bytes=48 * 1024 * 1024),
        cost_estimate=cost,
    )(scalars, x_p, w_prepared, sign_p, b_prepared)

    return out[:B, :out_features]


def _reference(x, weight, bias, fc_log_min, fc_log_max, fc_sign, bit_width=4,
               matmul_dtype=jnp.float32):
    """Pure-JAX mirror of the PyTorch LUQLinear forward (same scalar factoring
    as the kernel; numerically equivalent to the torch code modulo fp assoc.)."""
    scale = float(2 ** bit_width - 1)
    log_min_x, inv_q, dq_scale, log_min = _luq_scalars(
        x, fc_log_min, fc_log_max, scale)
    sign_x = jnp.sign(x)
    q = jnp.round((jnp.log(jnp.abs(x) + _EPS) - log_min_x) * inv_q)
    int_out = jnp.dot(q.astype(matmul_dtype),
                      jnp.asarray(weight, jnp.float32).astype(matmul_dtype).T,
                      preferred_element_type=jnp.float32)
    log_dq = int_out * dq_scale + log_min
    return (fc_sign * sign_x) * jnp.exp(log_dq) + jnp.asarray(bias, jnp.float32)


if __name__ == "__main__":
    key = jax.random.PRNGKey(0)
    kx, kw, kb = jax.random.split(key, 3)

    B, IN, OUT = 16, 32, 32          # reference broadcast requires IN == OUT
    bit_width = 4

    x = jax.random.normal(kx, (B, IN), dtype=jnp.float32)
    bound = 1.0 / float(IN) ** 0.5   # torch.nn.Linear-style init, deterministic
    weight = jax.random.uniform(kw, (OUT, IN), minval=-bound, maxval=bound,
                                dtype=jnp.float32)
    bias = jax.random.uniform(kb, (OUT,), minval=-bound, maxval=bound,
                              dtype=jnp.float32)
    # Extra attributes the reference forward assumes live on `self.fc`:
    fc_log_min, fc_log_max, fc_sign = -0.25, 0.25, 1.0

    def check(out, ref, rtol, atol):
        ok = jnp.abs(out - ref) <= atol + rtol * jnp.abs(ref)
        # A quantizer bin can legitimately flip when an element sits on a round()
        # boundary and the Pallas/XLA log implementations differ in the last ulp;
        # exclude rows containing such a tie from the comparison.
        scale = float(2 ** bit_width - 1)
        lmin, inv_q, _, _ = _luq_scalars(x, fc_log_min, fc_log_max, scale)
        pre = (jnp.log(jnp.abs(x) + _EPS) - lmin) * inv_q
        tie = jnp.abs(pre - jnp.round(pre)) > 0.5 - 1e-4
        row_ok = jnp.all(ok, axis=1) | jnp.any(tie, axis=1)
        assert bool(jnp.all(row_ok)), "kernel output mismatch vs reference"

    # --- exact-semantics path (f32 matmul) ---------------------------------
    w32, b32 = prepare_luq_params(weight, bias, matmul_dtype=jnp.float32)
    out_f32 = jax.block_until_ready(
        luq_linear(x, w32, b32, fc_log_min, fc_log_max, fc_sign, bit_width,
                   matmul_dtype=jnp.float32))
    ref_f32 = _reference(x, weight, bias, fc_log_min, fc_log_max, fc_sign,
                         bit_width, matmul_dtype=jnp.float32)
    assert out_f32.shape == (B, OUT)
    check(out_f32, ref_f32, rtol=1e-5, atol=1e-5)

    # --- default fast path (bf16 MXU; quantized activations exact in bf16) --
    wbf, bbf = prepare_luq_params(weight, bias, matmul_dtype=jnp.bfloat16)
    out_bf16 = jax.block_until_ready(
        luq_linear(x, wbf, bbf, fc_log_min, fc_log_max, fc_sign, bit_width,
                   matmul_dtype=jnp.bfloat16))
    ref_bf16 = _reference(x, weight, bias, fc_log_min, fc_log_max, fc_sign,
                          bit_width, matmul_dtype=jnp.bfloat16)
    assert out_bf16.shape == (B, OUT)
    check(out_bf16, ref_bf16, rtol=1e-3, atol=1e-3)

    print("KERNEL_OK")
</pallas_src>

<mosaic_0001>
module attributes {stable_mosaic.version = 11 : i64} {
  func.func @_luq_linear_kernel(%arg0: i32, %arg1: i32, %arg2: i32, %arg3: memref<5xf32, #tpu.memory_space<smem>>, %arg4: memref<16x128xf32, #tpu.memory_space<vmem>>, %arg5: memref<128x128xf32, #tpu.memory_space<vmem>>, %arg6: memref<16x128xf32, #tpu.memory_space<vmem>>, %arg7: memref<1x128xf32, #tpu.memory_space<vmem>>, %arg8: memref<16x128xf32, #tpu.memory_space<vmem>>, %arg9: memref<16x128xf32, #tpu.memory_space<vmem>>) attributes {dimension_semantics = [#tpu.dimension_semantics<parallel>, #tpu.dimension_semantics<parallel>, #tpu.dimension_semantics<arbitrary>], iteration_bounds = array<i64: 1, 1, 1>, scalar_prefetch = 0 : i64, scratch_operands = 1 : i64, tpu.core_type = #tpu.core_type<tc>, window_params = [{transform_indices = @transform_0, window_bounds = array<i64: 5>}, {transform_indices = @transform_1, window_bounds = array<i64: 16, 128>}, {transform_indices = @transform_2, window_bounds = array<i64: 128, 128>}, {transform_indices = @transform_3, window_bounds = array<i64: 16, 128>}, {transform_indices = @transform_4, window_bounds = array<i64: 1, 128>}, {transform_indices = @transform_5, window_bounds = array<i64: 16, 128>}]} {
    %c0_i32 = arith.constant 0 : i32
    %0 = arith.cmpi eq, %arg2, %c0_i32 : i32
    %1 = arith.extui %0 : i1 to i32
    %c0_i32_0 = arith.constant 0 : i32
    %2 = arith.cmpi ne, %1, %c0_i32_0 : i32
    scf.if %2 {
      %cst_12 = arith.constant 0.000000e+00 : f32
      %23 = vector.broadcast %cst_12 : f32 to vector<16x128xf32>
      %c0_13 = arith.constant 0 : index
      %c0_14 = arith.constant 0 : index
      %24 = vector.load %arg9[%c0_13, %c0_14] : memref<16x128xf32, #tpu.memory_space<vmem>>, vector<16x128xf32>
      tpu.vector_store %arg9[%c0_13, %c0_14], %23 {strides = array<i32>} : memref<16x128xf32, #tpu.memory_space<vmem>>, vector<16x128xf32>,
    } else {
    }
    %c0 = arith.constant 0 : index
    %3 = memref.load %arg3[%c0] : memref<5xf32, #tpu.memory_space<smem>>
    %c1 = arith.constant 1 : index
    %4 = memref.load %arg3[%c1] : memref<5xf32, #tpu.memory_space<smem>>
    %c0_1 = arith.constant 0 : index
    %c0_2 = arith.constant 0 : index
    %5 = vector.load %arg4[%c0_1, %c0_2] : memref<16x128xf32, #tpu.memory_space<vmem>>, vector<16x128xf32>
    %6 = math.absf %5 : vector<16x128xf32>
    %cst = arith.constant 9.99999993E-9 : f32
    %7 = vector.broadcast %cst : f32 to vector<16x128xf32>
    %8 = arith.addf %6, %7 : vector<16x128xf32>
    %9 = math.log %8 : vector<16x128xf32>
    %10 = vector.broadcast %3 : f32 to vector<16x128xf32>
    %11 = arith.subf %9, %10 : vector<16x128xf32>
    %12 = vector.broadcast %4 : f32 to vector<16x128xf32>
    %13 = arith.mulf %11, %12 : vector<16x128xf32>
    %14 = math.roundeven %13 : vector<16x128xf32>
    %c0_3 = arith.constant 0 : index
    %c0_4 = arith.constant 0 : index
    %15 = vector.load %arg9[%c0_3, %c0_4] : memref<16x128xf32, #tpu.memory_space<vmem>>, vector<16x128xf32>
    %c0_5 = arith.constant 0 : index
    %c0_6 = arith.constant 0 : index
    %16 = vector.load %arg5[%c0_5, %c0_6] : memref<128x128xf32, #tpu.memory_space<vmem>>, vector<128x128xf32>
    %cst_7 = arith.constant dense<0.000000e+00> : vector<16x128xf32>
    %17 = tpu.matmul %14, %16, %cst_7 {dimension_numbers = #tpu.dot_dimension_numbers<[1], [0], [0], [1], [0, 0, 1, 1], [], []>} : vector<16x128xf32>, vector<128x128xf32>, vector<16x128xf32> -> vector<16x128xf32>
    %18 = arith.addf %15, %17 : vector<16x128xf32>
    %c0_8 = arith.constant 0 : index
    %c0_9 = arith.constant 0 : index
    %19 = vector.load %arg9[%c0_8, %c0_9] : memref<16x128xf32, #tpu.memory_space<vmem>>, vector<16x128xf32>
    tpu.vector_store %arg9[%c0_8, %c0_9], %18 {strides = array<i32>} : memref<16x128xf32, #tpu.memory_space<vmem>>, vector<16x128xf32>,
    %c0_i32_10 = arith.constant 0 : i32
    %20 = arith.cmpi eq, %arg2, %c0_i32_10 : i32
    %21 = arith.extui %20 : i1 to i32
    %c0_i32_11 = arith.constant 0 : i32
    %22 = arith.cmpi ne, %21, %c0_i32_11 : i32
    scf.if %22 {
      %c2 = arith.constant 2 : index
      %23 = memref.load %arg3[%c2] : memref<5xf32, #tpu.memory_space<smem>>
      %c3 = arith.constant 3 : index
      %24 = memref.load %arg3[%c3] : memref<5xf32, #tpu.memory_space<smem>>
      %c4 = arith.constant 4 : index
      %25 = memref.load %arg3[%c4] : memref<5xf32, #tpu.memory_space<smem>>
      %c0_12 = arith.constant 0 : index
      %c0_13 = arith.constant 0 : index
      %26 = vector.load %arg9[%c0_12, %c0_13] : memref<16x128xf32, #tpu.memory_space<vmem>>, vector<16x128xf32>
      %27 = vector.broadcast %23 : f32 to vector<16x128xf32>
      %28 = arith.mulf %26, %27 : vector<16x128xf32>
      %29 = vector.broadcast %24 : f32 to vector<16x128xf32>
      %30 = arith.addf %28, %29 : vector<16x128xf32>
      %c0_14 = arith.constant 0 : index
      %c0_15 = arith.constant 0 : index
      %31 = vector.load %arg6[%c0_14, %c0_15] : memref<16x128xf32, #tpu.memory_space<vmem>>, vector<16x128xf32>
      %32 = vector.broadcast %25 : f32 to vector<16x128xf32>
      %33 = arith.mulf %32, %31 : vector<16x128xf32>
      %34 = math.exp %30 : vector<16x128xf32>
      %35 = arith.mulf %33, %34 : vector<16x128xf32>
      %c0_16 = arith.constant 0 : index
      %c0_17 = arith.constant 0 : index
      %36 = vector.load %arg7[%c0_16, %c0_17] : memref<1x128xf32, #tpu.memory_space<vmem>>, vector<1x128xf32>
      %37 = vector.broadcast %36 : vector<1x128xf32> to vector<16x128xf32>
      %38 = arith.addf %35, %37 : vector<16x128xf32>
      %c0_18 = arith.constant 0 : index
      %c0_19 = arith.constant 0 : index
      %39 = vector.load %arg8[%c0_18, %c0_19] : memref<16x128xf32, #tpu.memory_space<vmem>>, vector<16x128xf32>
      tpu.vector_store %arg8[%c0_18, %c0_19], %38 {strides = array<i32>} : memref<16x128xf32, #tpu.memory_space<vmem>>, vector<16x128xf32>,
    } else {
    }
    return
  }
  func.func @transform_0(%arg0: i32, %arg1: i32, %arg2: i32) -> i32 {
    %c0_i32 = arith.constant 0 : i32
    %c0_i32_0 = arith.constant 0 : i32
    return %c0_i32 : i32
  }
  func.func @transform_1(%arg0: i32, %arg1: i32, %arg2: i32) -> (i32, i32) {
    %c0_i32 = arith.constant 0 : i32
    return %arg0, %arg2 : i32, i32
  }
  func.func @transform_2(%arg0: i32, %arg1: i32, %arg2: i32) -> (i32, i32) {
    %c0_i32 = arith.constant 0 : i32
    return %arg2, %arg1 : i32, i32
  }
  func.func @transform_3(%arg0: i32, %arg1: i32, %arg2: i32) -> (i32, i32) {
    %c0_i32 = arith.constant 0 : i32
    return %arg0, %arg1 : i32, i32
  }
  func.func @transform_4(%arg0: i32, %arg1: i32, %arg2: i32) -> (i32, i32) {
    %c0_i32 = arith.constant 0 : i32
    %c0_i32_0 = arith.constant 0 : i32
    return %c0_i32, %arg1 : i32, i32
  }
  func.func @transform_5(%arg0: i32, %arg1: i32, %arg2: i32) -> (i32, i32) {
    %c0_i32 = arith.constant 0 : i32
    return %arg0, %arg1 : i32, i32
  }
}

</mosaic_0001>

<bundles_post_ra>
// kernel: tpu_custom_call.1
= control target key start
LH: loop header
LB: loop body
LE: loop exit
PB: predicated region body
PF: predicated region fallthrough
CT: control target
= control target key end

     0   :  { %10 = vsyncpa [#allocation6], 0  ;;  %s576_s0 = inlined_call_operand.hbm [shape: f32[5], index: 0, kind: input, shape index: {}]   ;;  %s577_s1 = inlined_call_operand.hbm [shape: f32[16,128], index: 1, kind: input, shape index: {}]   ;;  %s578_s2 = inlined_call_operand.hbm [shape: f32[128,128], index: 2, kind: input, shape index: {}]   ;;  %s579_s3 = inlined_call_operand.hbm [shape: f32[16,128], index: 3, kind: input, shape index: {}]   ;;  %s580_s4 = inlined_call_operand.vmem [shape: f32[1,128], index: 4, kind: input, shape index: {}]   ;;  %s581_s5 = inlined_call_operand.hbm [shape: f32[16,128], index: 5, kind: output, shape index: {}]  }
   0x1   :  { %11 = vsyncpa [#allocation4], 0 }
   0x2   :  { %12 = vsyncpa [#allocation9], 0 }
   0x3   :  { %13 = vsyncpa [#allocation5], 0  ;;  %s464_s18 = smov [#allocation8]   ;;  %s465_s20 = smov [#allocation7]  }
   0x4   :  { %s39_s19 = sshll.u32 %s464_s18, 4  ;;  %s27_s21 = sshll.u32 %s465_s20, 4  ;;  %s40_s19 = int_to_ptr.vmem [resolvable:$true] %s39_s19  ;;  %s28_s21 = int_to_ptr.vmem [resolvable:$true] %s27_s21 }
   0x5   :  { %s358_s24 = scalar_lea.hbm %s578_s2, 2048 }
   0x6   :  { %p359_p0 = scmp.ne.s32.totalorder %s578_s2, %s358_s24  ;;  %p362_p1 = scmp.lt.u32.totalorder %s358_s24, %s578_s2 }
   0x8   :  { %p364_p2 = pnand %p362_p1, %p359_p0 }
   0xa   :  { %367 = shalt.err (!%p364_p2)
}
   0xb   :  { %s368_s29 = scalar_lea.vmem %s40_s19, 2048  ;;  %p373_p4 = scmp.lt.s32.totalorder %s40_s19, %s40_s19 }
   0xc   :  { %p369_p3 = scmp.ne.s32.totalorder %s40_s19, %s368_s29  ;;  %p374_p5 = scmp.lt.s32.totalorder %s368_s29, %s368_s29 }
   0xe   :  { %p375_p6 = por %p374_p5, %p373_p4 }
  0x10   :  { %p376_p7 = pnand %p375_p6, %p369_p3 }
  0x12   :  { %379 = shalt.err (!%p376_p7)
}
  0x13   :  { %s466_s30 = smov 128   ;;  %s467_s6 = smov 8  }
  0x14   :  { %45 = dma.hbm_to_vmem [thread:$0]  %s578_s2, 2048, %s40_s19, [#allocation9], %s466_s30, %s466_s30, %s467_s6  }
  0x15   :  { %s380_s11 = scalar_lea.hbm %s576_s0, 16 }
  0x16   :  { %p381_p8 = scmp.ne.s32.totalorder %s576_s0, %s380_s11  ;;  %p384_p9 = scmp.lt.u32.totalorder %s380_s11, %s576_s0 }
  0x18   :  { %p386_p10 = pnand %p384_p9, %p381_p8 }
  0x1a   :  { %389 = shalt.err (!%p386_p10)
}
  0x1b   :  { %s468_s16 = smov [#allocation3]   ;;  %s390_s20 = scalar_lea.hbm %s577_s1, 256 }
  0x1c   :  { %21 = dma.hbm_to_smem %s576_s0, 16, %s468_s16, [#allocation6]  }
  0x1d   :  { %p391_p11 = scmp.ne.s32.totalorder %s577_s1, %s390_s20  ;;  %p394_p12 = scmp.lt.u32.totalorder %s390_s20, %s577_s1 }
  0x1f   :  { %p396_p13 = pnand %p394_p12, %p391_p11 }
  0x21   :  { %399 = shalt.err (!%p396_p13)
}
  0x22   :  { %s400_s26 = scalar_lea.vmem %s28_s21, 256  ;;  %p405_p1 = scmp.lt.s32.totalorder %s28_s21, %s28_s21 }
  0x23   :  { %p401_p0 = scmp.ne.s32.totalorder %s28_s21, %s400_s26  ;;  %p406_p2 = scmp.lt.s32.totalorder %s400_s26, %s400_s26 }
  0x25   :  { %p407_p3 = por %p406_p2, %p405_p1 }
  0x27   :  { %p408_p4 = pnand %p407_p3, %p401_p0 }
  0x29   :  { %411 = shalt.err (!%p408_p4)
}
  0x2a   :  { %33 = dma.hbm_to_vmem [thread:$0]  %s577_s1, 256, %s28_s21, [#allocation4], %s466_s30, %s466_s30, %s467_s6  }
  0x2b   :  { %s469_s28 = smov [#allocation10]   ;;  %s412_s9 = scalar_lea.hbm %s579_s3, 256 }
  0x2c   :  { %s51_s29 = sshll.u32 %s469_s28, 4  ;;  %p413_p5 = scmp.ne.s32.totalorder %s579_s3, %s412_s9  ;;  %s52_s29 = int_to_ptr.vmem [resolvable:$true] %s51_s29 }
  0x2d   :  { %p416_p6 = scmp.lt.u32.totalorder %s412_s9, %s579_s3 }
  0x2f   :  { %p418_p7 = pnand %p416_p6, %p413_p5 }
  0x31   :  { %421 = shalt.err (!%p418_p7)
}
  0x32   :  { %s422_s14 = scalar_lea.vmem %s52_s29, 256  ;;  %p427_p9 = scmp.lt.s32.totalorder %s52_s29, %s52_s29 }
  0x33   :  { %p423_p8 = scmp.ne.s32.totalorder %s52_s29, %s422_s14  ;;  %p428_p10 = scmp.lt.s32.totalorder %s422_s14, %s422_s14 }
  0x35   :  { %p429_p11 = por %p428_p10, %p427_p9 }
  0x37   :  { %p430_p12 = pnand %p429_p11, %p423_p8 }
  0x39   :  { %433 = shalt.err (!%p430_p12)
}
  0x3a   :  { %57 = dma.hbm_to_vmem [thread:$0]  %s579_s3, 256, %s52_s29, [#allocation9], %s466_s30, %s466_s30, %s467_s6  }
  0x3b   :  { %456 = dma.done.wait [#allocation6], 16  }
  0x3c   :  { %457 = vsyncadd [#allocation6], 4294967280 }
  0x3d   :  { %458 = dma.done.wait [#allocation4], 256  }
  0x3e   :  { %459 = vsyncadd [#allocation4], 4294967040 }
  0x3f   :  { %460 = dma.done.wait [#allocation9], 2304  }
  0x40   :  { %461 = vsyncadd [#allocation9], 4294964992 }
  0x41   :  { %72 = sfence }
  0x42   :  { %v101_v0 = vld [vmem:[#allocation8] sm:$0xff]  ;;  %v102_v1 = vld [vmem:[#allocation8 + $0x8] sm:$0xff]  ;;  %v103_v2 = vld [vmem:[#allocation8 + $0x10] sm:$0xff]  ;;  %s79_s3 = sld [smem:[#allocation3]]  ;;  %s251_s15 = sld [smem:[#allocation3 + $0x1]] }
  0x43   :  { %v309_v3 = vpack.c.bf16 %v102_v1, %v101_v0  ;;  %v104_v4 = vld [vmem:[#allocation8 + $0x18] sm:$0xff]  ;;  %v105_v6 = vld [vmem:[#allocation8 + $0x20] sm:$0xff]  ;;  %v106_v7 = vld [vmem:[#allocation8 + $0x28] sm:$0xff]  ;;  %s252_s16 = sld [smem:[#allocation3 + $0x2]]  ;;  %s253_s17 = sld [smem:[#allocation3 + $0x3]] }
  0x44   :  { %v313_v5 = vpack.c.bf16 %v104_v4, %v103_v2  ;;  %v317_v8 = vpack.c.bf16 %v106_v7, %v105_v6  ;;  %v81_v9 = vld [vmem:[#allocation7] sm:$0xff]  ;;  %v82_v10 = vld [vmem:[#allocation7 + $0x8] sm:$0xff]  ;;  %v109_v18 = vld [vmem:[#allocation8 + $0x40] sm:$0xff]  ;;  %s254_s18 = sld [smem:[#allocation3 + $0x4]]  ;;  %s470_s20 = smov [#allocation11]  }
  0x45   :  { %310 = vmatprep.subr.bf16.mxu0 %v309_v3  ;;  %v107_v11 = vld [vmem:[#allocation8 + $0x30] sm:$0xff]  ;;  %v108_v12 = vld [vmem:[#allocation8 + $0x38] sm:$0xff]  ;;  %v83_v13 = vand.u32 2147483647, %v81_v9  ;;  %v84_v14 = vand.u32 2147483647, %v82_v10 }
  0x46   :  { %312 = vmatpush3.bf16.msra.mxu0 %v309_v3  ;;  %v321_v17 = vpack.c.bf16 %v108_v12, %v107_v11  ;;  %v110_v19 = vld [vmem:[#allocation8 + $0x48] sm:$0xff]  ;;  %v111_v21 = vld [vmem:[#allocation8 + $0x50] sm:$0xff]  ;;  %v112_v22 = vld [vmem:[#allocation8 + $0x58] sm:$0xff]  ;;  %s237_s22 = sshll.u32 %s470_s20, 4  ;;  %s238_s22 = int_to_ptr.vmem [resolvable:$true] %s237_s22 }
  0x47   :  { %314 = vmatprep.subr.bf16.mxu0 %v313_v5  ;;  %v85_v15 = vadd.f32 1e-08, %v83_v13  ;;  %v86_v16 = vadd.f32 1e-08, %v84_v14  ;;  %v325_v20 = vpack.c.bf16 %v110_v19, %v109_v18  ;;  %v329_v23 = vpack.c.bf16 %v112_v22, %v111_v21  ;;  %v113_v24 = vld [vmem:[#allocation8 + $0x60] sm:$0xff]  ;;  %v114_v25 = vld [vmem:[#allocation8 + $0x68] sm:$0xff]  ;;  %p439_p0 = scmp.lt.s32.totalorder %s238_s22, %s238_s22 }
  0x48   :  { %v91_v27 = vstv %s79_s3  ;;  %v333_v29 = vpack.c.bf16 %v114_v25, %v113_v24  ;;  %v115_v31 = vld [vmem:[#allocation8 + $0x70] sm:$0xff]  ;;  %v116_v32 = vld [vmem:[#allocation8 + $0x78] sm:$0xff]  ;;  %v94_v34 = vstv %s251_s15  ;;  %v211_v52 = vld [vmem:[#allocation10 + $0x8] sm:$0xff]  ;;  %s434_s23 = scalar_lea.vmem %s238_s22, 256 }
  0x49   :  { %350 = vlog2.f32 %v85_v15  ;;  %v337_v37 = vpack.c.bf16 %v116_v32, %v115_v31  ;;  %v204_v42 = vstv %s252_s16  ;;  %v207_v44 = vstv %s253_s17  ;;  %v210_v54 = vld [vmem:[#allocation10] sm:$0xff]  ;;  %v255_v58 = vld [vmem:[%s580_s4] ss:$0 sm:$0xff]  ;;  %p435_p13 = scmp.ne.s32.totalorder %s238_s22, %s434_s23  ;;  %p440_p1 = scmp.lt.s32.totalorder %s434_s23, %s434_s23 }
  0x4a   :  { %316 = vmatpush3.bf16.msra.mxu0 %v313_v5  ;;  %352 = vlog2.f32 %v86_v16  ;;  %v212_v53 = vstv %s254_s18 }
  0x4b   :  { %318 = vmatprep.subr.bf16.mxu0 %v317_v8  ;;  %v214_v55 = vmul.f32 %v212_v53, %v211_v52  ;;  %v213_v56 = vmul.f32 %v212_v53, %v210_v54  ;;  %p441_p2 = por %p440_p1, %p439_p0 }
  0x4d   :  { %p442_p3 = pnand %p441_p2, %p435_p13 }
  0x4e   :  { %320 = vmatpush3.bf16.msra.mxu0 %v317_v8 }
  0x4f   :  { %322 = vmatprep.subr.bf16.mxu0 %v321_v17 }
  0x52   :  { %324 = vmatpush3.bf16.msra.mxu0 %v321_v17 }
  0x53   :  { %326 = vmatprep.subr.bf16.mxu0 %v325_v20  ;;  %v351_v26 = vpop.eup %350 }
  0x54   :  { %v353_v28 = vpop.eup %352  ;;  %v88_v30 = vmul.f32 0.6931472, %v351_v26 }
  0x55   :  { %v90_v33 = vmul.f32 0.6931472, %v353_v28 }
  0x56   :  { %328 = vmatpush3.bf16.msra.mxu0 %v325_v20  ;;  %v92_v35 = vsub.f32 %v88_v30, %v91_v27 }
  0x57   :  { %330 = vmatprep.subr.bf16.mxu0 %v329_v23  ;;  %v93_v36 = vsub.f32 %v90_v33, %v91_v27 }
  0x58   :  { %v95_v38 = vmul.f32 %v94_v34, %v92_v35 }
  0x59   :  { %v96_v39 = vmul.f32 %v94_v34, %v93_v36 }
  0x5a   :  { %332 = vmatpush3.bf16.msra.mxu0 %v329_v23  ;;  %v341_v40 = vround.rtne.f32 %v95_v38 }
  0x5b   :  { %334 = vmatprep.subr.bf16.mxu0 %v333_v29  ;;  %v342_v41 = vround.rtne.f32 %v96_v39 }
  0x5c   :  { %306 = vmatprep.mubr.f32.mxu0 %v341_v40 }
  0x5e   :  { %336 = vmatpush3.bf16.msra.mxu0 %v333_v29 }
  0x5f   :  { %338 = vmatprep.subr.bf16.mxu0 %v337_v37 }
  0x62   :  { %340 = vmatpush3.bf16.msra.mxu0 %v337_v37 }
  0x65   :  { %307 = vmatmul.mubr.f32.vlgmr.msra.gmra.mrb[0].mxu0 %v342_v41 }
 0x138   :  { %v308_v43 = vpop.f32.mrb[0].mxu0 }
 0x139   :  { %v206_v45 = vmul.f32 %v308_v43, %v204_v42  ;;  %v183_v46 = vpop.f32.mrb[1].mxu0 }
 0x13a   :  { %v205_v47 = vmul.f32 %v204_v42, %v183_v46 }
 0x13b   :  { %v209_v48 = vadd.f32 %v207_v44, %v206_v45 }
 0x13c   :  { %v208_v49 = vadd.f32 %v207_v44, %v205_v47 }
 0x13d   :  { %v217_v50 = vmul.f32 1.442695, %v209_v48 }
 0x13e   :  { %v215_v51 = vmul.f32 1.442695, %v208_v49 }
 0x13f   :  { %354 = vpow2.f32 %v217_v50 }
 0x140   :  { %356 = vpow2.f32 %v215_v51 }
 0x149   :  { %v355_v57 = vpop.eup %354 }
 0x14a   :  { %v357_v59 = vpop.eup %356  ;;  %v220_v60 = vmul.f32 %v355_v57, %v214_v55 }
 0x14b   :  { %v219_v61 = vmul.f32 %v357_v59, %v213_v56 }
 0x14c   :  { %v229_v62 = vadd.f32 %v255_v58, %v220_v60 }
 0x14d   :  { %v228_v63 = vadd.f32 %v255_v58, %v219_v61 }
 0x14e   :  { %231 = vst [vmem:[#allocation11 + $0x8] sm:$0xff] %v229_v62 }
 0x14f   :  { %230 = vst [vmem:[#allocation11] sm:$0xff] %v228_v63 }
 0x150   :  { %445 = shalt.err (!%p442_p3)
}
 0x151   :  { %s446_s4 = scalar_lea.hbm %s581_s5, 256 }
 0x152   :  { %p447_p4 = scmp.ne.s32.totalorder %s581_s5, %s446_s4  ;;  %p450_p5 = scmp.lt.u32.totalorder %s446_s4, %s581_s5 }
 0x154   :  { %p452_p6 = pnand %p450_p5, %p447_p4 }
 0x156   :  { %455 = shalt.err (!%p452_p6)
}
 0x157   :  { %243 = dma.vmem_to_hbm [thread:$0]  %s238_s22, 256, %s581_s5, [#allocation5], %s466_s30, %s466_s30, %s467_s6  }
 0x158   :  { %462 = dma.done.wait [#allocation5], 256  }
 0x159   :  { %463 = vsyncadd [#allocation5], 4294967040 }
 0x15a   :  { %247 = vsyncpa [#allocation4], 1 }
 0x15b   :  { %248 = vsyncpa [#allocation9], 1 }
 0x15c   :  { %249 = vsyncpa [#allocation5], 1 }
 0x15d   :  { %250 = vsyncpa [#allocation6], 1 }

</bundles_post_ra>
